<compile_context>
chip_gen: v5e
topology: v5e:2x2
jax: 0.10.0
libtpu: 0.0.40
codegen_flags: <defaults>
</compile_context>

<pallas_src>
import jax
import jax.numpy as jnp
from jax import lax
from jax.experimental import pallas as pl
from jax.experimental.pallas import tpu as pltpu


def _categorical_net_kernel(x_ref, w_ref, b_ref, *out_refs):
    """out_refs = (logits_t, logprobs_t, probs_t) or (logprobs_t, probs_t)."""
    if len(out_refs) == 3:
        logits_ref, logprobs_ref, probs_ref = out_refs
    else:
        logits_ref = None
        logprobs_ref, probs_ref = out_refs

    x = x_ref[...]            # (TB, D_in)
    w = w_ref[...]            # (D_out, D_in), resident (f32 or pre-cast bf16)
    b = b_ref[...]            # (D_out, 1) f32, resident

    if x.dtype != w.dtype:    # bf16 MXU path: only the activation cast stays in-kernel
        x = x.astype(w.dtype)

    # Linear layer emitted directly in lane-major layout:
    #   out[o, b] = sum_k w[o, k] * x[b, k]   (f32 accumulation on the MXU)
    logits_t = lax.dot_general(
        w, x, dimension_numbers=(((1,), (1,)), ((), ())),
        preferred_element_type=jnp.float32) + b          # (D_out, TB)

    # Stable log-softmax over the class (sublane) axis -- what
    # torch.distributions.Categorical(logits=...) normalizes to.
    m = jnp.max(logits_t, axis=0, keepdims=True)
    shifted = logits_t - m
    lse = jnp.log(jnp.sum(jnp.exp(shifted), axis=0, keepdims=True))
    logprobs_t = shifted - lse

    if logits_ref is not None:
        logits_ref[...] = logits_t.astype(logits_ref.dtype)
    logprobs_ref[...] = logprobs_t.astype(logprobs_ref.dtype)
    # probs fused here: exp runs on the (otherwise idle) EUP slot and saves the
    # wrapper-side XLA op's extra HBM read + write.
    probs_ref[...] = jnp.exp(logprobs_t).astype(probs_ref.dtype)


def prepare_params(weight, bias, *, use_bf16=False):
    """One-time parameter prep (hoisted out of the per-step forward).

    weight: (D_out, D_in) kept in its native orientation (the kernel contracts
    last-with-last, no transpose needed).  bias -> (D_out, 1) f32 (added after
    f32 accumulation).  use_bf16 pre-casts the resident weight ONCE, halving
    its VMEM footprint and HBM->VMEM DMA; it is explicit opt-in because it
    loosens numerics vs an f32 torch reference.
    """
    w = weight.astype(jnp.bfloat16) if use_bf16 else weight
    return w, bias.reshape(-1, 1).astype(jnp.float32)


def _pick_batch_tile(batch, d_in, d_out, w_itemsize=4):
    """VMEM- and generation-aware batch tile (rows of x per grid step).

    Returns (tb, vmem_limit_bytes).  tb is either the full batch (single
    block) or a multiple of 128 so the lane-major (D_out, tb) output blocks
    stay lane-dense / unmasked.
    """
    try:
        vmem_cap = int(pltpu.get_tpu_info().vmem_capacity_bytes)
    except Exception:
        vmem_cap = 64 << 20  # conservative (v7x-sized) fallback
    # ~40% of physical VMEM: ~25 MiB on v7x (64 MiB), capped at 48 MiB on
    # v5e/v6e (128 MiB).  Leaves headroom for Mosaic internal scratch.
    budget = min(int(vmem_cap * 0.4), 48 << 20)

    resident = d_in * d_out * w_itemsize + d_out * 4                 # W + bias
    # per batch row: double-buffered x + 3 double-buffered f32 output streams
    per_row = 2 * d_in * 4 + 3 * 2 * d_out * 4
    max_rows = max(128, (budget - resident) // max(per_row, 1))

    if batch <= max_rows:
        if batch >= 256:
            # >= 2 grid steps so the 'parallel' axis can shard across v7x's
            # two TensorCores (no effect on v5e/v6e); keep the tile a multiple
            # of 128 for lane-dense output stores.
            tb = min(batch, ((batch + 1) // 2 + 127) // 128 * 128)
        else:
            tb = batch
    else:
        tb = max(128, (min(max_rows, batch) // 128) * 128)

    needed = resident + tb * per_row + (1 << 20)
    vmem_limit = int(budget if needed <= budget else needed)
    return int(tb), vmem_limit


def categorical_net_forward(x, w, b2, *, lane_major=False,
                            with_raw_logits=True, dist_dtype=jnp.float32):
    """Forward pass of CategoricalNet.

    x: (B, D_in); w: (D_out, D_in); b2: (D_out, 1)  (from prepare_params).

    Returns a dict with the Categorical distribution parameters:
      'raw_logits' (optional), 'logits' (normalized log-softmax), 'probs'.
    With lane_major=True they come back in the kernel-native (D_out, B) layout
    (no extra transpose op); otherwise (B, D_out) for parity with the module.
    dist_dtype=jnp.bfloat16 halves writeback of logprobs/probs (useful on v5e).
    """
    B, D_in = x.shape
    D_out = w.shape[0]

    tb, vmem_limit = _pick_batch_tile(B, D_in, D_out, w.dtype.itemsize)
    grid = (pl.cdiv(B, tb),)

    n_out = 3 if with_raw_logits else 2
    out_dtypes = ([jnp.float32] if with_raw_logits else []) + [dist_dtype, dist_dtype]
    out_shape = tuple(jax.ShapeDtypeStruct((D_out, B), dt) for dt in out_dtypes)
    out_specs = tuple(pl.BlockSpec((D_out, tb), lambda i: (0, i))
                      for _ in range(n_out))

    outs = pl.pallas_call(
        _categorical_net_kernel,
        out_shape=out_shape,
        grid=grid,
        in_specs=[
            pl.BlockSpec((tb, D_in), lambda i: (i, 0)),       # x: tiled over batch
            pl.BlockSpec((D_out, D_in), lambda i: (0, 0)),    # W: resident
            pl.BlockSpec((D_out, 1), lambda i: (0, 0)),       # bias: resident
        ],
        out_specs=out_specs,
        compiler_params=pltpu.CompilerParams(
            dimension_semantics=("parallel",),
            vmem_limit_bytes=vmem_limit),
    )(x, w, b2)

    if with_raw_logits:
        logits_t, logprobs_t, probs_t = outs
    else:
        logits_t = None
        logprobs_t, probs_t = outs

    if not lane_major:
        # Parity layout with the torch module; hot paths should prefer
        # lane_major=True and consume (D_out, B) directly (saves a transpose).
        logprobs_t = logprobs_t.T
        probs_t = probs_t.T
        if logits_t is not None:
            logits_t = logits_t.T

    result = {"logits": logprobs_t, "probs": probs_t}
    if logits_t is not None:
        result["raw_logits"] = logits_t

    # TODO(synk): CustomFixedCategorical.sample / log_probs / mode are
    # host/JAX-side distribution ops (PRNG sampling, gather, argmax) computed
    # from 'logits'/'probs'; they are not part of the kernel hot path.
    return result


def orthogonal_init(key, rows, cols, gain):
    """Deterministic orthogonal init matching nn.init.orthogonal_ semantics."""
    flat = jax.random.normal(key, (max(rows, cols), min(rows, cols)),
                             dtype=jnp.float32)
    q, r = jnp.linalg.qr(flat)
    q = q * jnp.sign(jnp.diag(r))
    if rows < cols:
        q = q.T
    return gain * q[:rows, :cols]


if __name__ == "__main__":
    key = jax.random.PRNGKey(0)
    k_x, k_w = jax.random.split(key)

    batch = 2
    num_inputs = 32   # hidden size feeding the policy head
    num_outputs = 8   # number of discrete actions

    x = jax.random.normal(k_x, (batch, num_inputs), dtype=jnp.float32)
    weight = orthogonal_init(k_w, num_outputs, num_inputs, gain=0.01)
    bias = jnp.zeros((num_outputs,), dtype=jnp.float32)

    # Parameter prep happens ONCE (not per forward call). bf16 is opt-in only.
    w, b2 = prepare_params(weight, bias, use_bf16=False)
    jax.block_until_ready((w, b2))

    out = categorical_net_forward(x, w, b2)
    jax.block_until_ready(out)

    # Reference check in plain JAX (f32 path -> tight tolerance).
    ref_logits = x @ weight.T + bias
    ref_norm = ref_logits - jax.scipy.special.logsumexp(
        ref_logits, axis=-1, keepdims=True)
    ref_probs = jax.nn.softmax(ref_logits, axis=-1)
    assert out["raw_logits"].shape == (batch, num_outputs)
    assert jnp.allclose(out["raw_logits"], ref_logits, atol=1e-5)
    assert jnp.allclose(out["logits"], ref_norm, atol=1e-5)
    assert jnp.allclose(out["probs"], ref_probs, atol=1e-5)

    print("KERNEL_OK")
</pallas_src>

<mosaic_0001>
module attributes {stable_mosaic.version = 11 : i64} {
  func.func @_categorical_net_kernel(%arg0: i32, %arg1: memref<2x32xf32, #tpu.memory_space<vmem>>, %arg2: memref<8x32xf32, #tpu.memory_space<vmem>>, %arg3: memref<8x1xf32, #tpu.memory_space<vmem>>, %arg4: memref<8x2xf32, #tpu.memory_space<vmem>>, %arg5: memref<8x2xf32, #tpu.memory_space<vmem>>, %arg6: memref<8x2xf32, #tpu.memory_space<vmem>>) attributes {dimension_semantics = [#tpu.dimension_semantics<parallel>], iteration_bounds = array<i64: 1>, scalar_prefetch = 0 : i64, scratch_operands = 0 : i64, tpu.core_type = #tpu.core_type<tc>, window_params = [{transform_indices = @transform_0, window_bounds = array<i64: 2, 32>}, {pipeline_mode = #tpu.pipeline_mode<synchronous>, transform_indices = @transform_1, window_bounds = array<i64: 8, 32>}, {pipeline_mode = #tpu.pipeline_mode<synchronous>, transform_indices = @transform_2, window_bounds = array<i64: 8, 1>}, {transform_indices = @transform_3, window_bounds = array<i64: 8, 2>}, {transform_indices = @transform_4, window_bounds = array<i64: 8, 2>}, {transform_indices = @transform_5, window_bounds = array<i64: 8, 2>}]} {
    %c0 = arith.constant 0 : index
    %c0_0 = arith.constant 0 : index
    %0 = vector.load %arg1[%c0, %c0_0] : memref<2x32xf32, #tpu.memory_space<vmem>>, vector<2x32xf32>
    %c0_1 = arith.constant 0 : index
    %c0_2 = arith.constant 0 : index
    %1 = vector.load %arg2[%c0_1, %c0_2] : memref<8x32xf32, #tpu.memory_space<vmem>>, vector<8x32xf32>
    %c0_3 = arith.constant 0 : index
    %c0_4 = arith.constant 0 : index
    %2 = vector.load %arg3[%c0_3, %c0_4] : memref<8x1xf32, #tpu.memory_space<vmem>>, vector<8x1xf32>
    %cst = arith.constant dense<0.000000e+00> : vector<8x2xf32>
    %3 = tpu.matmul %1, %0, %cst {dimension_numbers = #tpu.dot_dimension_numbers<[1], [1], [0], [0], [0, 0, 1, 0], [], []>} : vector<8x32xf32>, vector<2x32xf32>, vector<8x2xf32> -> vector<8x2xf32>
    %4 = vector.broadcast %2 : vector<8x1xf32> to vector<8x2xf32>
    %5 = arith.addf %3, %4 : vector<8x2xf32>
    %cst_5 = arith.constant dense<0xFF800000> : vector<2xf32>
    %6 = vector.multi_reduction <maximumf>, %5, %cst_5 [0] : vector<8x2xf32> to vector<2xf32>
    %7 = vector.shape_cast %6 : vector<2xf32> to vector<1x2xf32>
    %8 = vector.broadcast %7 : vector<1x2xf32> to vector<8x2xf32>
    %9 = arith.subf %5, %8 : vector<8x2xf32>
    %10 = math.exp %9 : vector<8x2xf32>
    %cst_6 = arith.constant dense<0.000000e+00> : vector<2xf32>
    %11 = vector.multi_reduction <add>, %10, %cst_6 [0] : vector<8x2xf32> to vector<2xf32>
    %12 = vector.shape_cast %11 : vector<2xf32> to vector<1x2xf32>
    %13 = math.log %12 : vector<1x2xf32>
    %14 = vector.broadcast %13 : vector<1x2xf32> to vector<8x2xf32>
    %15 = arith.subf %9, %14 : vector<8x2xf32>
    %c0_7 = arith.constant 0 : index
    %c0_8 = arith.constant 0 : index
    %16 = vector.load %arg4[%c0_7, %c0_8] : memref<8x2xf32, #tpu.memory_space<vmem>>, vector<8x2xf32>
    tpu.vector_store %arg4[%c0_7, %c0_8], %5 {strides = array<i32>} : memref<8x2xf32, #tpu.memory_space<vmem>>, vector<8x2xf32>,
    %c0_9 = arith.constant 0 : index
    %c0_10 = arith.constant 0 : index
    %17 = vector.load %arg5[%c0_9, %c0_10] : memref<8x2xf32, #tpu.memory_space<vmem>>, vector<8x2xf32>
    tpu.vector_store %arg5[%c0_9, %c0_10], %15 {strides = array<i32>} : memref<8x2xf32, #tpu.memory_space<vmem>>, vector<8x2xf32>,
    %18 = math.exp %15 : vector<8x2xf32>
    %c0_11 = arith.constant 0 : index
    %c0_12 = arith.constant 0 : index
    %19 = vector.load %arg6[%c0_11, %c0_12] : memref<8x2xf32, #tpu.memory_space<vmem>>, vector<8x2xf32>
    tpu.vector_store %arg6[%c0_11, %c0_12], %18 {strides = array<i32>} : memref<8x2xf32, #tpu.memory_space<vmem>>, vector<8x2xf32>,
    return
  }
  func.func @transform_0(%arg0: i32) -> (i32, i32) {
    %c0_i32 = arith.constant 0 : i32
    %c0_i32_0 = arith.constant 0 : i32
    return %arg0, %c0_i32 : i32, i32
  }
  func.func @transform_1(%arg0: i32) -> (i32, i32) {
    %c0_i32 = arith.constant 0 : i32
    %c0_i32_0 = arith.constant 0 : i32
    %c0_i32_1 = arith.constant 0 : i32
    return %c0_i32, %c0_i32_0 : i32, i32
  }
  func.func @transform_2(%arg0: i32) -> (i32, i32) {
    %c0_i32 = arith.constant 0 : i32
    %c0_i32_0 = arith.constant 0 : i32
    %c0_i32_1 = arith.constant 0 : i32
    return %c0_i32, %c0_i32_0 : i32, i32
  }
  func.func @transform_3(%arg0: i32) -> (i32, i32) {
    %c0_i32 = arith.constant 0 : i32
    %c0_i32_0 = arith.constant 0 : i32
    return %c0_i32, %arg0 : i32, i32
  }
  func.func @transform_4(%arg0: i32) -> (i32, i32) {
    %c0_i32 = arith.constant 0 : i32
    %c0_i32_0 = arith.constant 0 : i32
    return %c0_i32, %arg0 : i32, i32
  }
  func.func @transform_5(%arg0: i32) -> (i32, i32) {
    %c0_i32 = arith.constant 0 : i32
    %c0_i32_0 = arith.constant 0 : i32
    return %c0_i32, %arg0 : i32, i32
  }
}

</mosaic_0001>

<bundles_post_ra>
// kernel: tpu_custom_call.1
= control target key start
LH: loop header
LB: loop body
LE: loop exit
PB: predicated region body
PF: predicated region fallthrough
CT: control target
= control target key end

     0   :  { %11 = vsyncpa [#allocation3], 0  ;;  %s142_s21 = smov [#allocation2]   ;;  %s197_s0 = inlined_call_operand.hbm [shape: f32[2,32], index: 0, kind: input, shape index: {}]   ;;  %s198_s1 = inlined_call_operand.vmem [shape: f32[8,32], index: 1, kind: input, shape index: {}]   ;;  %s199_s2 = inlined_call_operand.vmem [shape: f32[8,1], index: 2, kind: input, shape index: {}]   ;;  %s200_s3 = inlined_call_operand.vmem [shape: f32[8,2], index: 3, kind: output, shape index: {0}]   ;;  %s201_s4 = inlined_call_operand.vmem [shape: f32[8,2], index: 4, kind: output, shape index: {1}]   ;;  %s202_s5 = inlined_call_operand.vmem [shape: f32[8,2], index: 5, kind: output, shape index: {2}]  }
   0x1   :  { %s17_s20 = sshll.u32 %s197_s0, 4  ;;  %s19_s22 = sshll.u32 %s142_s21, 4  ;;  %s18_s20 = int_to_ptr.hbm [resolvable:$true] %s17_s20  ;;  %s20_s22 = int_to_ptr.vmem [resolvable:$true] %s19_s22 }
   0x2   :  { %22 = dma.hbm_to_vmem [thread:$0]  %s18_s20, 32, %s20_s22, [#allocation3]  }
   0x3   :  { %140 = dma.done.wait [#allocation3], 32  }
   0x4   :  { %141 = vsyncadd [#allocation3], 4294967264  ;;  %v143_v0 = vmov 0   ;;  %vm39_vm0 = vcmask 261120   ;;  %v31_v1 = vld [vmem:[#allocation2] sm:$0x3] }
   0x5   :  { %109 = vset.pattern.permute.xlu0 %v143_v0  ;;  %v33_v2 = vld [vmem:[%s199_s2] sm:$0xff]  ;;  %105 = vmatpush.xpose.msk.msra.mxu0 %vm39_vm0, %v31_v1  ;;  %vm66_vm1 = vcmask 15360  }
   0x6   :  { %v32_v3 = vld [vmem:[%s198_s1] sm:$0xff]  ;;  %36 = vperm.xlu0 %109, %v33_v2  }
   0x8   :  { %106 = vmatmul.msk.f32.vlgmr.msra.gmra.mxu0 %vm39_vm0, %v32_v3 }
  0x78   :  { %v37_v4 = vpop.permute.xlu0 %36 }
  0x85   :  { %v63_v5 = vpop.f32.mrf.mxu0 }
  0x86   :  { %v64_v6 = vadd.f32 %v63_v5, %v37_v4 }
  0x88   :  { %v67_v7 = vsel %vm66_vm1, %v64_v6, -inf  ;;  %87 = vst.msk [vmem:[%s200_s3] sm:$0xff] %vm66_vm1, %v64_v6 }
  0x89   :  { %v68_v8 = vrot.slane %v67_v7, 4 }
  0x8b   :  { %v69_v9 = vmax.f32 %v67_v7, %v68_v8 }
  0x8d   :  { %v70_v10 = vrot.slane %v69_v9, 2 }
  0x8f   :  { %v71_v11 = vmax.f32 %v69_v9, %v70_v10 }
  0x91   :  { %v72_v12 = vrot.slane %v71_v11, 1 }
  0x93   :  { %v73_v13 = vmax.f32 %v71_v11, %v72_v12 }
  0x95   :  { %v74_v14 = vsub.f32 %v64_v6, %v73_v13 }
  0x97   :  { %v75_v15 = vmul.f32 1.442695, %v74_v14 }
  0x99   :  { %110 = vpow2.f32 %v75_v15 }
  0x9f   :  { %v111_v16 = vpop.eup %110 }
  0xa0   :  { %v77_v17 = vsel %vm66_vm1, %v111_v16, 0.0 }
  0xa1   :  { %v78_v18 = vrot.slane %v77_v17, 4 }
  0xa3   :  { %v79_v19 = vadd.f32 %v78_v18, %v77_v17 }
  0xa5   :  { %v80_v20 = vrot.slane %v79_v19, 2 }
  0xa7   :  { %v81_v21 = vadd.f32 %v80_v20, %v79_v19 }
  0xa9   :  { %v82_v22 = vrot.slane %v81_v21, 1 }
  0xab   :  { %v83_v23 = vadd.f32 %v82_v22, %v81_v21 }
  0xad   :  { %112 = vlog2.f32 %v83_v23 }
  0xb3   :  { %v113_v24 = vpop.eup %112 }
  0xb4   :  { %v85_v25 = vmul.f32 0.6931472, %v113_v24 }
  0xb6   :  { %v86_v26 = vsub.f32 %v74_v14, %v85_v25 }
  0xb8   :  { %88 = vst.msk [vmem:[%s201_s4] sm:$0xff] %vm66_vm1, %v86_v26  ;;  %v89_v27 = vmul.f32 1.442695, %v86_v26 }
  0xba   :  { %114 = vpow2.f32 %v89_v27 }
  0xc0   :  { %v115_v28 = vpop.eup %114 }
  0xc1   :  { %91 = vst.msk [vmem:[%s202_s5] sm:$0xff] %vm66_vm1, %v115_v28 }
  0xc2   :  { %104 = vsyncpa [#allocation3], 1 }

</bundles_post_ra>
